<compile_context>
chip_gen: v6e
topology: v6e:2x2x1
jax: 0.10.0
libtpu: 0.0.40
codegen_flags: <defaults>
</compile_context>

<pallas_src>
import jax
import jax.numpy as jnp
from jax import lax
from jax.experimental import pallas as pl
from jax.experimental.pallas import tpu as pltpu

OUTPUT_CHANNELS = 32


def _round_up(x, m):
    return (x + m - 1) // m * m


def prepare_params(conv_w, conv_b, fc_w, fc_b, H, W,
                   block_k=8192, weight_dtype=jnp.bfloat16):
    """One-time (offline) parameter re-arrangement; do NOT redo per forward call.

    conv_w: (C, 1, 3, 1), conv_b: (C,), fc_w: (O, C*(H-2)*W), fc_b: (O,)
    """
    C = conv_w.shape[0]
    Hc = H - 3 + 1                       # valid conv along H, kernel height 3
    P = Hc * W                           # spatial positions per conv channel
    O = fc_w.shape[0]
    assert conv_w.shape == (C, 1, 3, 1)
    assert fc_w.shape[1] == C * P

    # K-tile size for the contraction over P (multiple of 128 lanes).
    TK = _round_up(min(block_k, P), 128)
    P_pad = _round_up(P, TK)

    # Conv params -> flat f32 vectors for SMEM scalar reads.
    cw_flat = conv_w[:, 0, :, 0].reshape(C * 3).astype(jnp.float32)   # [c*3 + tap]
    cb = conv_b.astype(jnp.float32)                                   # (C,)

    # Classifier weight: (O, C*P) -> (C, O, P_pad).  PyTorch flatten order is
    # (c, h, w) so fc_w[o, c*P + p] == fw[c, o, p].  P on lanes (dense tiles);
    # zero-padding along P means padded positions contribute nothing.
    fw = jnp.transpose(fc_w.reshape(O, C, P), (1, 0, 2))              # (C, O, P)
    fw = jnp.pad(fw, ((0, 0), (0, 0), (0, P_pad - P))).astype(weight_dtype)
    fb = fc_b.reshape(O, 1).astype(jnp.float32)                       # (O, 1)

    return dict(cw=cw_flat, cb=cb, fw=fw, fb=fb,
                C=C, O=O, H=H, W=W, P=P, P_pad=P_pad, TK=TK)


def _kernel(cw_ref, cb_ref, taps_ref, fw_ref, fb_ref, out_ref, acc_ref):
    # grid = (batch_tiles, k_tiles, C); b parallel, (k, c) are reduction axes.
    k = pl.program_id(1)
    c = pl.program_id(2)

    @pl.when((k == 0) & (c == 0))
    def _():
        acc_ref[...] = jnp.zeros_like(acc_ref)

    # Conv2d((3,1)) + bias for channel c on this (TK, TB) tile of
    # (positions, batch): three scalar*vreg FMAs on the pre-shifted taps.
    # Scalars stay f32 (SMEM); bf16-stored taps are promoted to f32 for the
    # FMAs, and only the MXU operand is cast back down.
    w0 = cw_ref[3 * c]
    w1 = cw_ref[3 * c + 1]
    w2 = cw_ref[3 * c + 2]
    bias = cb_ref[c]
    s = w0 * taps_ref[0] + w1 * taps_ref[1] + w2 * taps_ref[2] + bias   # (TK, TB)
    feat = jnp.maximum(s, 0.2 * s)                                      # LeakyReLU(0.2)

    # MXU: (O, TK) @ (TK, TB) -> (O, TB); batch tile on the N/lane axis.
    acc_ref[...] += lax.dot_general(
        fw_ref[0], feat.astype(fw_ref.dtype),
        dimension_numbers=(((1,), (0,)), ((), ())),
        preferred_element_type=jnp.float32)

    @pl.when((k == pl.num_programs(1) - 1) & (c == pl.num_programs(2) - 1))
    def _():
        logits = acc_ref[...] + fb_ref[...]                             # (O, TB)
        out_ref[...] = pl.reciprocal(1.0 + jnp.exp(-logits),
                                     approx=True).astype(out_ref.dtype)


def esc_model3_forward(x, params, *, batch_tile=128, tap_dtype=jnp.bfloat16,
                       vmem_limit_mb=64):
    """x: (B, 1, H, W) float32 (NCHW). Returns (B, O) float32.

    tap_dtype: storage dtype for the pre-shifted conv taps (bf16 halves HBM
    traffic and the largest double-buffered VMEM buffer; use f32 on v5e if
    tighter accuracy is needed).
    """
    B, Cin, H, W = x.shape
    assert Cin == 1 and H == params["H"] and W == params["W"]
    C, O = params["C"], params["O"]
    P, P_pad, TK = params["P"], params["P_pad"], params["TK"]
    nk = P_pad // TK

    # Batch tile now lives on the 128-lane axis of every tile -> multiple of 128.
    # On v7x pick TB so that nb = Bp/TB >= 2 when B > 128 (feeds both TCs);
    # when B spans multiple tiles, growing TB toward nb==1 avoids re-streaming
    # the classifier weight per batch tile.
    TB = max(128, _round_up(min(batch_tile, max(B, 1)), 128))
    Bp = _round_up(B, TB)
    nb = Bp // TB

    # Precompute the three conv taps once per forward (independent of c):
    # taps[t, p, b] = x[b, 0, h+t, w] with p = h*W + w  -> batch on lanes.
    xt = x.reshape(B, H * W).astype(jnp.float32).T                       # (H*W, B)
    taps = jnp.stack([xt[0:P], xt[W:W + P], xt[2 * W:2 * W + P]], axis=0)  # (3, P, B)
    taps = jnp.pad(taps, ((0, 0), (0, P_pad - P), (0, Bp - B)))          # (3, P_pad, Bp)
    taps = taps.astype(tap_dtype)

    out = pl.pallas_call(
        _kernel,
        out_shape=jax.ShapeDtypeStruct((O, Bp), jnp.float32),
        grid=(nb, nk, C),
        in_specs=[
            pl.BlockSpec(memory_space=pltpu.MemorySpace.SMEM),           # conv weights (3C,)
            pl.BlockSpec(memory_space=pltpu.MemorySpace.SMEM),           # conv bias (C,)
            pl.BlockSpec((3, TK, TB), lambda b, k, c: (0, k, b)),        # conv taps
            pl.BlockSpec((1, O, TK), lambda b, k, c: (c, 0, k)),         # fc weight slab
            pl.BlockSpec((O, 1), lambda b, k, c: (0, 0)),                # fc bias
        ],
        out_specs=pl.BlockSpec((O, TB), lambda b, k, c: (0, b)),
        scratch_shapes=[pltpu.VMEM((O, TB), jnp.float32)],               # accumulator
        compiler_params=pltpu.CompilerParams(
            dimension_semantics=("parallel", "arbitrary", "arbitrary"),
            vmem_limit_bytes=int(vmem_limit_mb) * 1024 * 1024),
    )(params["cw"], params["cb"], taps, params["fw"], params["fb"])

    # Tiny (O, B) -> (B, O) transpose in the wrapper (layout plumbing only).
    return out[:, :B].T


def reference_forward(x, conv_w, conv_b, fc_w, fc_b):
    """Pure-JAX reference mirroring the PyTorch module (f32)."""
    B = x.shape[0]
    conv = lax.conv_general_dilated(
        x, conv_w, window_strides=(1, 1), padding="VALID",
        dimension_numbers=("NCHW", "OIHW", "NCHW"))
    conv = conv + conv_b[None, :, None, None]
    feat = jnp.where(conv >= 0.0, conv, 0.2 * conv)
    flat = feat.reshape(B, -1)
    return jax.nn.sigmoid(flat @ fc_w.T + fc_b[None, :])


if __name__ == "__main__":
    # Small shapes consistent with the module structure (the real spatial size
    # 257x862 is too large for a demo; the math/tiling structure is identical).
    B, H, W_img = 2, 16, 16
    C = OUTPUT_CHANNELS
    O = OUTPUT_CHANNELS
    F = C * (H - 2) * W_img            # flattened conv features = 7168

    key = jax.random.PRNGKey(0)
    kx, kcw, kcb, kfw, kfb = jax.random.split(key, 5)
    x = jax.random.normal(kx, (B, 1, H, W_img), jnp.float32)
    conv_w = 0.1 * jax.random.normal(kcw, (C, 1, 3, 1), jnp.float32)
    conv_b = 0.1 * jax.random.normal(kcb, (C,), jnp.float32)
    fc_w = 0.02 * jax.random.normal(kfw, (O, F), jnp.float32)
    fc_b = 0.1 * jax.random.normal(kfb, (O,), jnp.float32)

    # One-time parameter re-arrangement.  block_k=128 keeps >1 K-tile even at
    # this tiny demo shape so the K-accumulation path is exercised.  At the
    # real shape use block_k ~8192 (fits v7x's 64 MiB VMEM; v6e/v5e can go to
    # 16384 with vmem_limit_mb ~96).
    params = prepare_params(conv_w, conv_b, fc_w, fc_b, H, W_img,
                            block_k=128, weight_dtype=jnp.bfloat16)

    out = esc_model3_forward(x, params, batch_tile=128,
                             tap_dtype=jnp.bfloat16, vmem_limit_mb=64)
    out = jax.block_until_ready(out)

    ref = reference_forward(x, conv_w, conv_b, fc_w, fc_b)
    assert out.shape == (B, O), out.shape
    # bf16 weights/taps + approx reciprocal => loose-ish tolerance vs f32 ref.
    if not bool(jnp.allclose(out, ref, atol=1e-2, rtol=1e-2)):
        raise AssertionError(
            f"mismatch vs reference: max abs err = {float(jnp.max(jnp.abs(out - ref)))}")

    print("KERNEL_OK")
</pallas_src>

<mosaic_0001>
module attributes {stable_mosaic.version = 11 : i64} {
  func.func @_kernel(%arg0: i32, %arg1: i32, %arg2: i32, %arg3: memref<96xf32, #tpu.memory_space<smem>>, %arg4: memref<32xf32, #tpu.memory_space<smem>>, %arg5: memref<3x128x128xbf16, #tpu.memory_space<vmem>>, %arg6: memref<1x32x128xbf16, #tpu.memory_space<vmem>>, %arg7: memref<32x1xf32, #tpu.memory_space<vmem>>, %arg8: memref<32x128xf32, #tpu.memory_space<vmem>>, %arg9: memref<32x128xf32, #tpu.memory_space<vmem>>) attributes {dimension_semantics = [#tpu.dimension_semantics<parallel>, #tpu.dimension_semantics<arbitrary>, #tpu.dimension_semantics<arbitrary>], iteration_bounds = array<i64: 1, 2, 32>, scalar_prefetch = 0 : i64, scratch_operands = 1 : i64, tpu.core_type = #tpu.core_type<tc>, window_params = [{transform_indices = @transform_0, window_bounds = array<i64: 96>}, {transform_indices = @transform_1, window_bounds = array<i64: 32>}, {transform_indices = @transform_2, window_bounds = array<i64: 3, 128, 128>}, {transform_indices = @transform_3, window_bounds = array<i64: 1, 32, 128>}, {pipeline_mode = #tpu.pipeline_mode<synchronous>, transform_indices = @transform_4, window_bounds = array<i64: 32, 1>}, {transform_indices = @transform_5, window_bounds = array<i64: 32, 128>}]} {
    %c0_i32 = arith.constant 0 : i32
    %0 = arith.cmpi eq, %arg1, %c0_i32 : i32
    %c0_i32_0 = arith.constant 0 : i32
    %1 = arith.cmpi eq, %arg2, %c0_i32_0 : i32
    %2 = arith.andi %0, %1 : i1
    %3 = arith.extui %2 : i1 to i32
    %c0_i32_1 = arith.constant 0 : i32
    %4 = arith.cmpi ne, %3, %c0_i32_1 : i32
    scf.if %4 {
      %cst_20 = arith.constant 0.000000e+00 : f32
      %52 = vector.broadcast %cst_20 : f32 to vector<32x128xf32>
      %c0_21 = arith.constant 0 : index
      %c0_22 = arith.constant 0 : index
      %53 = vector.load %arg9[%c0_21, %c0_22] : memref<32x128xf32, #tpu.memory_space<vmem>>, vector<32x128xf32>
      tpu.vector_store %arg9[%c0_21, %c0_22], %52 {strides = array<i32>} : memref<32x128xf32, #tpu.memory_space<vmem>>, vector<32x128xf32>,
    } else {
    }
    %c3_i32 = arith.constant 3 : i32
    %5 = arith.muli %c3_i32, %arg2 : i32
    %6 = arith.index_cast %5 : i32 to index
    %7 = memref.load %arg3[%6] : memref<96xf32, #tpu.memory_space<smem>>
    %c3_i32_2 = arith.constant 3 : i32
    %8 = arith.muli %c3_i32_2, %arg2 : i32
    %c1_i32 = arith.constant 1 : i32
    %9 = arith.addi %8, %c1_i32 : i32
    %10 = arith.index_cast %9 : i32 to index
    %11 = memref.load %arg3[%10] : memref<96xf32, #tpu.memory_space<smem>>
    %c3_i32_3 = arith.constant 3 : i32
    %12 = arith.muli %c3_i32_3, %arg2 : i32
    %c2_i32 = arith.constant 2 : i32
    %13 = arith.addi %12, %c2_i32 : i32
    %14 = arith.index_cast %13 : i32 to index
    %15 = memref.load %arg3[%14] : memref<96xf32, #tpu.memory_space<smem>>
    %16 = arith.index_cast %arg2 : i32 to index
    %17 = memref.load %arg4[%16] : memref<32xf32, #tpu.memory_space<smem>>
    %c0 = arith.constant 0 : index
    %c0_4 = arith.constant 0 : index
    %c0_5 = arith.constant 0 : index
    %18 = vector.load %arg5[%c0, %c0_4, %c0_5] : memref<3x128x128xbf16, #tpu.memory_space<vmem>>, vector<1x128x128xbf16>
    %19 = vector.shape_cast %18 : vector<1x128x128xbf16> to vector<128x128xbf16>
    %20 = arith.extf %19 : vector<128x128xbf16> to vector<128x128xf32>
    %21 = vector.broadcast %7 : f32 to vector<128x128xf32>
    %22 = arith.mulf %21, %20 : vector<128x128xf32>
    %c1 = arith.constant 1 : index
    %c0_6 = arith.constant 0 : index
    %c0_7 = arith.constant 0 : index
    %23 = vector.load %arg5[%c1, %c0_6, %c0_7] : memref<3x128x128xbf16, #tpu.memory_space<vmem>>, vector<1x128x128xbf16>
    %24 = vector.shape_cast %23 : vector<1x128x128xbf16> to vector<128x128xbf16>
    %25 = arith.extf %24 : vector<128x128xbf16> to vector<128x128xf32>
    %26 = vector.broadcast %11 : f32 to vector<128x128xf32>
    %27 = arith.mulf %26, %25 : vector<128x128xf32>
    %28 = arith.addf %22, %27 : vector<128x128xf32>
    %c2 = arith.constant 2 : index
    %c0_8 = arith.constant 0 : index
    %c0_9 = arith.constant 0 : index
    %29 = vector.load %arg5[%c2, %c0_8, %c0_9] : memref<3x128x128xbf16, #tpu.memory_space<vmem>>, vector<1x128x128xbf16>
    %30 = vector.shape_cast %29 : vector<1x128x128xbf16> to vector<128x128xbf16>
    %31 = arith.extf %30 : vector<128x128xbf16> to vector<128x128xf32>
    %32 = vector.broadcast %15 : f32 to vector<128x128xf32>
    %33 = arith.mulf %32, %31 : vector<128x128xf32>
    %34 = arith.addf %28, %33 : vector<128x128xf32>
    %35 = vector.broadcast %17 : f32 to vector<128x128xf32>
    %36 = arith.addf %34, %35 : vector<128x128xf32>
    %cst = arith.constant 2.000000e-01 : f32
    %37 = vector.broadcast %cst : f32 to vector<128x128xf32>
    %38 = arith.mulf %37, %36 : vector<128x128xf32>
    %39 = arith.maximumf %36, %38 : vector<128x128xf32>
    %c0_10 = arith.constant 0 : index
    %c0_11 = arith.constant 0 : index
    %40 = vector.load %arg9[%c0_10, %c0_11] : memref<32x128xf32, #tpu.memory_space<vmem>>, vector<32x128xf32>
    %c0_12 = arith.constant 0 : index
    %c0_13 = arith.constant 0 : index
    %c0_14 = arith.constant 0 : index
    %41 = vector.load %arg6[%c0_12, %c0_13, %c0_14] : memref<1x32x128xbf16, #tpu.memory_space<vmem>>, vector<1x32x128xbf16>
    %42 = vector.shape_cast %41 : vector<1x32x128xbf16> to vector<32x128xbf16>
    %43 = arith.truncf %39 : vector<128x128xf32> to vector<128x128xbf16>
    %cst_15 = arith.constant dense<0.000000e+00> : vector<32x128xf32>
    %44 = tpu.matmul %42, %43, %cst_15 {dimension_numbers = #tpu.dot_dimension_numbers<[1], [0], [0], [1], [0, 0, 1, 1], [], []>} : vector<32x128xbf16>, vector<128x128xbf16>, vector<32x128xf32> -> vector<32x128xf32>
    %45 = arith.addf %40, %44 : vector<32x128xf32>
    %c0_16 = arith.constant 0 : index
    %c0_17 = arith.constant 0 : index
    %46 = vector.load %arg9[%c0_16, %c0_17] : memref<32x128xf32, #tpu.memory_space<vmem>>, vector<32x128xf32>
    tpu.vector_store %arg9[%c0_16, %c0_17], %45 {strides = array<i32>} : memref<32x128xf32, #tpu.memory_space<vmem>>, vector<32x128xf32>,
    %c1_i32_18 = arith.constant 1 : i32
    %47 = arith.cmpi eq, %arg1, %c1_i32_18 : i32
    %c31_i32 = arith.constant 31 : i32
    %48 = arith.cmpi eq, %arg2, %c31_i32 : i32
    %49 = arith.andi %47, %48 : i1
    %50 = arith.extui %49 : i1 to i32
    %c0_i32_19 = arith.constant 0 : i32
    %51 = arith.cmpi ne, %50, %c0_i32_19 : i32
    scf.if %51 {
      %c0_20 = arith.constant 0 : index
      %c0_21 = arith.constant 0 : index
      %52 = vector.load %arg9[%c0_20, %c0_21] : memref<32x128xf32, #tpu.memory_space<vmem>>, vector<32x128xf32>
      %c0_22 = arith.constant 0 : index
      %c0_23 = arith.constant 0 : index
      %53 = vector.load %arg7[%c0_22, %c0_23] : memref<32x1xf32, #tpu.memory_space<vmem>>, vector<32x1xf32>
      %54 = vector.broadcast %53 : vector<32x1xf32> to vector<32x128xf32>
      %55 = arith.addf %52, %54 : vector<32x128xf32>
      %cst_24 = arith.constant 0.000000e+00 : f32
      %56 = vector.broadcast %cst_24 : f32 to vector<32x128xf32>
      %57 = arith.subf %56, %55 : vector<32x128xf32>
      %58 = math.exp %57 : vector<32x128xf32>
      %cst_25 = arith.constant 1.000000e+00 : f32
      %59 = vector.broadcast %cst_25 : f32 to vector<32x128xf32>
      %60 = arith.addf %59, %58 : vector<32x128xf32>
      %61 = tpu.reciprocal %60 {approx = true} : vector<32x128xf32> -> vector<32x128xf32>
      %c0_26 = arith.constant 0 : index
      %c0_27 = arith.constant 0 : index
      %62 = vector.load %arg8[%c0_26, %c0_27] : memref<32x128xf32, #tpu.memory_space<vmem>>, vector<32x128xf32>
      tpu.vector_store %arg8[%c0_26, %c0_27], %61 {strides = array<i32>} : memref<32x128xf32, #tpu.memory_space<vmem>>, vector<32x128xf32>,
    } else {
    }
    return
  }
  func.func @transform_0(%arg0: i32, %arg1: i32, %arg2: i32) -> i32 {
    %c0_i32 = arith.constant 0 : i32
    %c0_i32_0 = arith.constant 0 : i32
    return %c0_i32 : i32
  }
  func.func @transform_1(%arg0: i32, %arg1: i32, %arg2: i32) -> i32 {
    %c0_i32 = arith.constant 0 : i32
    %c0_i32_0 = arith.constant 0 : i32
    return %c0_i32 : i32
  }
  func.func @transform_2(%arg0: i32, %arg1: i32, %arg2: i32) -> (i32, i32, i32) {
    %c0_i32 = arith.constant 0 : i32
    %c0_i32_0 = arith.constant 0 : i32
    return %c0_i32, %arg1, %arg0 : i32, i32, i32
  }
  func.func @transform_3(%arg0: i32, %arg1: i32, %arg2: i32) -> (i32, i32, i32) {
    %c0_i32 = arith.constant 0 : i32
    %c0_i32_0 = arith.constant 0 : i32
    return %arg2, %c0_i32, %arg1 : i32, i32, i32
  }
  func.func @transform_4(%arg0: i32, %arg1: i32, %arg2: i32) -> (i32, i32) {
    %c0_i32 = arith.constant 0 : i32
    %c0_i32_0 = arith.constant 0 : i32
    %c0_i32_1 = arith.constant 0 : i32
    return %c0_i32, %c0_i32_0 : i32, i32
  }
  func.func @transform_5(%arg0: i32, %arg1: i32, %arg2: i32) -> (i32, i32) {
    %c0_i32 = arith.constant 0 : i32
    %c0_i32_0 = arith.constant 0 : i32
    return %c0_i32, %arg0 : i32, i32
  }
}

</mosaic_0001>

<bundles_post_ra>
// kernel: tpu_custom_call.1
= control target key start
LH: loop header
LB: loop body
LE: loop exit
PB: predicated region body
PF: predicated region fallthrough
CT: control target
= control target key end

     0   :  { %s1906_s0 = inlined_call_operand.vmem [shape: f32[96], index: 0, kind: input, shape index: {}]   ;;  %s1907_s1 = inlined_call_operand.vmem [shape: f32[32], index: 1, kind: input, shape index: {}]   ;;  %s1908_s2 = inlined_call_operand.hbm [shape: bf16[3,256,128], index: 2, kind: input, shape index: {}]   ;;  %s1909_s3 = inlined_call_operand.hbm [shape: bf16[32,32,256], index: 3, kind: input, shape index: {}]   ;;  %s1910_s4 = inlined_call_operand.vmem [shape: f32[32,1], index: 4, kind: input, shape index: {}]   ;;  %s1911_s5 = inlined_call_operand.hbm [shape: f32[32,128], index: 5, kind: output, shape index: {}]  }
   0x1   :  { %1926 = sst [smem:[#allocation28_spill]] %s1906_s0 }
   0x2   :  { %1927 = sst [smem:[#allocation29_spill]] %s1907_s1 }
   0x3   :  { %1928 = sst [smem:[#allocation30_spill]] %s1908_s2 }
   0x4   :  { %1929 = sst [smem:[#allocation31_spill]] %s1910_s4 }
   0x5   :  { %1930 = sst [smem:[#allocation32_spill]] %s1911_s5 }
   0x6   :  { %10 = vsyncpa [#allocation6], 0 }
   0x7   :  { %11 = vsyncpa [#allocation8], 0 }
   0x8   :  { %12 = vsyncpa [#allocation4], 0 }
   0x9   :  { %14 = vsyncpa [#allocation4 + $0x1], 0 }
   0xa   :  { %15 = vsyncpa [#allocation11], 0 }
   0xb   :  { %17 = vsyncpa [#allocation11 + $0x1], 0 }
   0xc   :  { %18 = vsyncpa [#allocation5], 0  ;;  %s1477_s18 = smov 0   ;;  %s1479_s19 = smov 0  }
   0xd   :  { %s1481_s20 = smov 0   ;;  %s1483_s21 = smov 0  }
   0xe   :  { %s1485_s22 = smov 0   ;;  %s1487_s23 = smov 0  }
   0xf   :  { %s1489_s24 = smov 0   ;;  %s1491_s25 = smov 0  }
  0x10   :  { %s1493_s26 = smov 0   ;;  %s1495_s27 = smov 0  }
  0x11   :  { %s1497_s28 = smov 0  }
  0x12 LB: > { %1931 = sst [smem:[#allocation21_spill]] %s1408_s23  ;;  %s1912_s29 = sadd.s32 4294967295, %s1428_s28   ;;  %s1428_s28 = sphi %s1497_s28, %s24_s28   ;;  %s1424_s27 = sphi %s1495_s27, %s1976_s27   ;;  %s1420_s26 = sphi %s1493_s26, %s1975_s26   ;;  %s1416_s25 = sphi %s1491_s25, %s1974_s25   ;;  %s1412_s24 = sphi %s1489_s24, %s1973_s24   ;;  %s1408_s23 = sphi %s1487_s23, %s1965_s23   ;;  %s1404_s22 = sphi %s1485_s22, %s1972_s22   ;;  %s1400_s21 = sphi %s1483_s21, %s1971_s21   ;;  %s1396_s20 = sphi %s1481_s20, %s1970_s20   ;;  %s1392_s19 = sphi %s1479_s19, %s1969_s19   ;;  %s1388_s18 = sphi %s1477_s18, %s1968_s18  }
  0x13   : > { %1932 = sst [smem:[#allocation22_spill]] %s1412_s24  ;;  %s36_s30 = sadd.s32 1, %s1420_s26 }
  0x14   : > { %1933 = sst [smem:[#allocation23_spill]] %s1428_s28  ;;  %p37_p0 = scmp.ge.s32.totalorder %s36_s30, 32 }
  0x15   : > { %s39_s6 = sadd.s32 1, %s1424_s27  ;;  %s94_s7 = sadd.s32 1, %s1408_s23 }
  0x16   : > { %p101_p1 = scmp.ne.s32.totalorder %s1408_s23, %s1404_s22  ;;  %s1978_s30 = smov (%p37_p0, %s36_s30), 0 }
  0x17   : > { %1934 = sst [smem:[#allocation24_spill]] %s1978_s30  ;;  %s1980_s6 = smov (!%p37_p0, %s39_s6), %s1424_s27 }
  0x18   : > { %p102_p2 = scmp.eq.s32.totalorder %s1428_s28, 0  ;;  %p107_p3 = scmp.ne.s32.totalorder %s1404_s22, %s1400_s21 }
  0x19   : > { %p41_p4 = scmp.ge.s32.totalorder %s1980_s6, 2  ;;  %p1543_p5 = scmp.eq.s32.totalorder %s1912_s29, 0 }
  0x1a   : > { %p1549_p6 = por %p102_p2, %p101_p1  ;;  %s117_s10 = ssub.s32 %s1420_s26, %s1978_s30 }
  0x1b   : > { %s1935_s8 = scalar_select %p1543_p5, 1, 0 }
  0x1c   : > { %s1936_s9 = scalar_select %p1549_p6, 1, 0 }
  0x1d   : > { %s1982_s6 = smov (%p41_p4, %s1980_s6), 0  ;;  %p1559_p7 = por %p1543_p5, %p107_p3 }
  0x1e   : > { %1937 = sst [smem:[#allocation25_spill]] %s1982_s6  ;;  %s122_s12 = sadd.s32 1, %s1396_s20 }
  0x1f   : > { %s1938_s11 = scalar_select %p1559_p7, 1, 0 }
  0x20   : > { %s89_s13 = ssub.s32 %s1424_s27, %s1982_s6  ;;  %p129_p8 = scmp.ne.s32.totalorder %s1396_s20, %s1392_s19 }
  0x21   : > { %p92_p9 = scmp.eq.s32.totalorder %s89_s13, 0  ;;  %s119_s14 = sor.u32 %s117_s10, %s89_s13 }
  0x22   : > { %p120_p10 = scmp.eq.s32.totalorder %s119_s14, 0  ;;  %p1570_p11 = por %p129_p8, %p102_p2 }
  0x23   : > { %s1575_s16 = scalar_select %p92_p9, %s1408_s23, %s94_s7  }
  0x24   : > { %s1939_s15 = scalar_select %p1570_p11, 1, 0 }
  0x25   : > { %1940 = sst [smem:[#allocation26_spill]] %s1575_s16  ;;  %p135_p12 = scmp.ne.s32.totalorder %s1392_s19, %s1388_s18 }
  0x26   : > { %s1578_s17 = scalar_select %p120_p10, %s1396_s20, %s122_s12  }
  0x27   : > { %p877_p13 = scmp.ge.s32.totalorder %s1428_s28, 1  ;;  %p193_p0 = scmp.lt.s32.totalorder %s1428_s28, 65 }
  0x28   : > { %1941 = sst [smem:[#allocation27_spill]] %s1578_s17  ;;  %p1586_p1 = por %p135_p12, %p1543_p5 }
  0x29   : > { %p1590_p3 = pnand %p877_p13, %p193_p0  ;;  %s1944_s0 = sld [smem:[#allocation28_spill]] }
  0x2a   : > { %s1942_s21 = scalar_select %p1586_p1, 1, 0 }
  0x2b   : > { %s1943_s10 = scalar_select %p1590_p3, 1, 0 }
  0x2c   : > { %p1105_p2 = pneg %p1590_p3  ;;  %s1945_s1 = sld [smem:[#allocation29_spill]] }
  0x2e   : > { %p1604_p4 = pnand %p1105_p2, %p1543_p5 }
  0x2f   : > { %s206_s7 = sshll.u32 %s1944_s0, 4  ;;  %s207_s7 = int_to_ptr.vmem [resolvable:$true] %s206_s7 }
  0x30   : > { %s1242_s30 = scalar_lea.vmem %s207_s7, 16  ;;  %p1244_p9 = pneg %p1604_p4 }
  0x31   : > { %p1243_p8 = scmp.ne.s32.totalorder %s207_s7, %s1242_s30  ;;  %p1250_p13 = scmp.lt.s32.totalorder %s207_s7, %s207_s7 }
  0x32   : > { %s217_s29 = sshll.u32 %s1945_s1, 4  ;;  %p1251_p0 = scmp.lt.s32.totalorder %s1242_s30, %s1242_s30  ;;  %s218_s29 = int_to_ptr.vmem [resolvable:$true] %s217_s29 }
  0x33   : > { %p1245_p10 = pnand %p1244_p9, %p1243_p8 }
  0x34   : > { %p1252_p1 = por %p1251_p0, %p1250_p13 }
  0x35   : > { %p1246_p12 = pneg %p1245_p10 }
  0x37   : > { %p1253_p7 = pnand %p1252_p1, %p1246_p12 }
  0x39   : > { %1256 = shalt.err (!%p1253_p7)
}
  0x3a   : > { %s1430_s13 = smov [#allocation3]   ;;  %s1257_s14 = scalar_lea.vmem %s218_s29, 16 }
  0x3b   : > { %1108 = dma.vmem_to_smem (!%p1604_p4), %s207_s7, 16, %s1430_s13, [#allocation6]  }
  0x3c   : > { %p1258_p2 = scmp.ne.s32.totalorder %s218_s29, %s1257_s14  ;;  %p1265_p11 = scmp.lt.s32.totalorder %s218_s29, %s218_s29 }
  0x3d   : > { %p1266_p6 = scmp.lt.s32.totalorder %s1257_s14, %s1257_s14 }
  0x3e   : > { %p1260_p5 = pnand %p1258_p2, %p1244_p9 }
  0x3f   : > { %p1267_p8 = por %p1266_p6, %p1265_p11 }
  0x40   : > { %p1261_p3 = pneg %p1260_p5 }
  0x42   : > { %p1268_p10 = pnand %p1267_p8, %p1261_p3 }
  0x44   : > { %1271 = shalt.err (!%p1268_p10)
}
  0x45   : > { %s1431_s12 = smov [#allocation7]   ;;  %p880_p1 = scmp.ge.s32.totalorder %s1428_s28, 64 }
  0x46   : > { %1111 = dma.vmem_to_smem (!%p1604_p4), %s218_s29, 16, %s1431_s12, [#allocation8]  }
  0x47   : > { %227 = sbr.rel (%p880_p1) target bundleno = 109 (0x6d), region = 28 }
  0x4c   : > { %s231_s30 = sand.u32 1, %s1408_s23   ;;  %s930_s18 = sshll.u32 %s1424_s27, 10 }
  0x4d   : > { %s1080_s7 = smul.u32 192, %s231_s30  ;;  %s1432_s13 = smov 2048  }
  0x4e   : > { %p1947_p5 = scmp.ne.s32.totalorder %s1936_s9, 0  ;;  %s1948_s2 = sld [smem:[#allocation30_spill]] }
  0x4f   : > { %s235_s1 = scalar_lea.vmem [#allocation9], %s1080_s7  ;;  %s1433_s17 = smov 1024  }
  0x50   : > { %1087 = sst [smem:[#allocation14]] (%p1947_p5), %s1432_s13  ;;  %s255_s16 = sshll.u32 %s235_s1, 4  ;;  %s256_s16 = int_to_ptr.vmem [resolvable:$true] %s255_s16 }
  0x51   : > { %s1086_s29 = scalar_select %p1947_p5, [#allocation0], [#allocation15] }
  0x52   : > { %1088 = sst [smem:[#allocation14 + $0x1]] (%p1947_p5), %s1433_s17  ;;  %s1434_s23 = smov 16  }
  0x53   : > { %s247_s0 = sld [smem:[%s1086_s29]]   ;;  %s1435_s5 = smov 64  }
  0x54   : > { %s242_s12 = scalar_lea.hbm %s1948_s2, %s930_s18  ;;  %1089 = sst [smem:[#allocation14 + $0x2]] (%p1947_p5), %s1434_s23 }
  0x55   : > { %1090 = sst [smem:[#allocation14 + $0x3]] (%p1947_p5), %s1435_s5  ;;  %s1436_s13 = smov 4  }
  0x56   : > { %1091 = sst [smem:[#allocation14 + $0x4]] (%p1947_p5), %s1435_s5  ;;  %s232_s7 = scalar_lea.sflag [#allocation4], %s231_s30 }
  0x57   : > { %1092 = sst [smem:[#allocation14 + $0x5]] (%p1947_p5), %s1436_s13  ;;  %s1437_s6 = smov 131072  }
  0x58   : > { %s278_s1 = sand.u32 1, %s1396_s20   ;;  %s886_s23 = sshll.u32 %s1420_s26, 3 }
  0x59   : > { %s883_s18 = sshll.u32 %s247_s0, 26  ;;  %s885_s17 = sshll.u32 %s278_s1, 4 }
  0x5a   : > { %s884_s29 = sadd.s32 134217728, %s883_s18  ;;  %s287_s14 = sadd.s32 %s1424_s27, %s886_s23 }
  0x5b   : > { %1093 = dma.general (%p1947_p5), %s242_s12, 3072, %s256_s16, %s232_s7, %s1437_s6, [#allocation14], %s884_s29, 0  }
  0x5c   : > { %s887_s2 = sshll.u32 %s287_s14, 6  ;;  %s282_s28 = scalar_lea.vmem [#allocation10], %s885_s17 }
  0x5d   : > { %s290_s5 = sshll.u32 %s282_s28, 4  ;;  %s289_s0 = scalar_lea.hbm %s1909_s3, %s887_s2  ;;  %s291_s5 = int_to_ptr.vmem [resolvable:$true] %s290_s5 }
  0x5e   : > { %s279_s30 = scalar_lea.sflag [#allocation11], %s278_s1  ;;  %s1284_s13 = scalar_lea.vmem %s291_s5, 256 }
  0x5f   : > { %p1285_p6 = scmp.ne.s32.totalorder %s291_s5, %s1284_s13  ;;  %p1949_p7 = scmp.ne.s32.totalorder %s1939_s15, 0 }
  0x60   : > { %s1438_s9 = smov [#allocation10]  }
  0x61   : > { %p1286_p11 = pnand %p1285_p6, %p1949_p7  ;;  %s1288_s16 = sshll.u32 %s1438_s9, 4  ;;  %s1289_s16 = int_to_ptr.vmem [resolvable:$false] %s1288_s16 }
  0x62   : > { %s1290_s12 = scalar_lea.vmem %s1289_s16, 512  ;;  %p1291_p4 = scmp.lt.s32.totalorder %s291_s5, %s1289_s16 }
  0x63   : > { %p1287_p3 = pneg %p1286_p11  ;;  %p1292_p9 = scmp.lt.s32.totalorder %s1290_s12, %s1284_s13 }
  0x65   : > { %p1293_p12 = por %p1292_p9, %p1291_p4 }
  0x67   : > { %p1294_p13 = pnand %p1293_p12, %p1287_p3 }
  0x69   : > { %1297 = shalt.err (!%p1294_p13)
}
  0x6a   : > { %s1439_s28 = smov 128   ;;  %s1440_s4 = smov 64  }
  0x6b   : > { %s1441_s2 = smov 4  }
  0x6c   : > { %1094 = dma.hbm_to_vmem [thread:$0]  (%p1949_p7), %s289_s0, 256, %s291_s5, %s279_s30, %s1439_s28, %s1440_s4, %s1441_s2  }
  0x6d PF: > { %p1950_p0 = scmp.ne.s32.totalorder %s1943_s10, 0 }
  0x6e   : > { %p1951_p2 = scmp.ne.s32.totalorder (!%p1950_p0), %s1935_s8, 0 }
  0x6f   : > { %302 = sbr.rel (%p1950_p0) target bundleno = 610 (0x262), region = 40 }
  0x74   : > { %1367 = dma.done.wait (%p1951_p2), [#allocation6], 16  }
  0x75   : > { %1369 = vsyncadd (%p1951_p2), [#allocation6], 4294967280 }
  0x76   : > { %1371 = dma.done.wait (%p1951_p2), [#allocation8], 16  }
  0x77   : > { %1373 = vsyncadd (%p1951_p2), [#allocation8], 4294967280  ;;  %s312_s24 = sand.u32 1, %s1404_s22   ;;  %p1952_p8 = scmp.ne.s32.totalorder %s1938_s11, 0 }
  0x78   : > { %s1081_s15 = smul.u32 192, %s312_s24  ;;  %s313_s18 = scalar_lea.sflag [#allocation4], %s312_s24 }
  0x7a   : > { %s1657_s29 = scalar_lea.vmem [#allocation9], %s1081_s15 }
  0x7b   : > { %1375 = dma.done.wait (%p1952_p8), %s313_s18, 3072  }
  0x7c   : > { %1377 = vsyncadd (%p1952_p8), %s313_s18, 4294964224  ;;  %s321_s10 = sand.u32 1, %s1392_s19   ;;  %p1953_p10 = scmp.ne.s32.totalorder %s1942_s21, 0 }
  0x7d   : > { %s1664_s7 = sshll.u32 %s321_s10, 4  ;;  %s322_s8 = scalar_lea.sflag [#allocation11], %s321_s10 }
  0x7e   : > { %s325_s6 = scalar_lea.vmem [#allocation10], %s1664_s7 }
  0x7f   : > { %1379 = dma.done.wait (%p1953_p10), %s322_s8, 256  }
  0x80   : > { %1381 = vsyncadd (%p1953_p10), %s322_s8, 4294967040 }
  0x81   : > { %330 = sfence }
  0x82   : > { %s1954_s1 = sld [smem:[#allocation22_spill]]  ;;  %p355_p1 = scmp.eq.s32.totalorder %s1416_s25, 0 }
  0x88   : > { %p356_p5 = scmp.eq.s32.totalorder %s1954_s1, 0 }
  0x8a   : > { %p357_p6 = pnand %p356_p5, %p355_p1 }
  0x8c   : > { %360 = sbr.rel (%p357_p6) target bundleno = 148 (0x94), region = 60 }
  0x91   : > { %v1442_v0 = vmov 0.0  }
  0x92   : > { %361 = vst [vmem:[#allocation2 + $0x10] sm:$0xff] %v1442_v0  ;;  %362 = vst [vmem:[#allocation2] sm:$0xff] %v1442_v0 }
  0x93   : > { %363 = vst [vmem:[#allocation2 + $0x18] sm:$0xff] %v1442_v0  ;;  %364 = vst [vmem:[#allocation2 + $0x8] sm:$0xff] %v1442_v0 }
  0x94 PF: > { %s1955_s11 = sld [smem:[#allocation22_spill]]  ;;  %v1033_v1 = vld [vmem:[%s1657_s29 + $0x38] sm:$0xff]   ;;  %v1032_v8 = vld [vmem:[%s1657_s29 + $0x30] sm:$0xff]   ;;  %v1031_v15 = vld [vmem:[%s1657_s29 + $0x28] sm:$0xff]   ;;  %p687_p7 = scmp.eq.s32.totalorder %s1416_s25, 1 }
  0x95   : > { %v1041_v2 = vld [vmem:[%s1657_s29 + $0x78] sm:$0xff]   ;;  %v961_v4 = vunpack.c.l.bf16 %v1033_v1  ;;  %v962_v5 = vunpack.c.h.bf16 %v1033_v1  ;;  %v1040_v9 = vld [vmem:[%s1657_s29 + $0x70] sm:$0xff]   ;;  %v957_v13 = vunpack.c.l.bf16 %v1032_v8  ;;  %v958_v14 = vunpack.c.h.bf16 %v1032_v8  ;;  %v1039_v16 = vld [vmem:[%s1657_s29 + $0x68] sm:$0xff]  }
  0x96   : > { %v1049_v3 = vld [vmem:[%s1657_s29 + $0xb8] sm:$0xff]   ;;  %v993_v6 = vunpack.c.l.bf16 %v1041_v2  ;;  %v994_v7 = vunpack.c.h.bf16 %v1041_v2  ;;  %v1048_v10 = vld [vmem:[%s1657_s29 + $0xb0] sm:$0xff]   ;;  %v1692_v17 = vld [vmem:[%s1657_s29 + $0xa8] sm:$0xff]   ;;  %v989_v18 = vunpack.c.l.bf16 %v1040_v9  ;;  %v990_v19 = vunpack.c.h.bf16 %v1040_v9 }
  0x97   : > { %v1025_v11 = vunpack.c.l.bf16 %v1049_v3  ;;  %v1026_v12 = vunpack.c.h.bf16 %v1049_v3  ;;  %v1021_v20 = vunpack.c.l.bf16 %v1048_v10  ;;  %v1022_v21 = vunpack.c.h.bf16 %v1048_v10  ;;  %v1698_v22 = vld [vmem:[%s1657_s29 + $0x20] sm:$0xff]   ;;  %v1709_v29 = vld [vmem:[%s1657_s29 + $0x18] sm:$0xff]  }
  0x98   : > { %v1701_v23 = vld [vmem:[%s1657_s29 + $0x60] sm:$0xff]   ;;  %v953_v25 = vunpack.c.l.bf16 %v1031_v15  ;;  %v954_v26 = vunpack.c.h.bf16 %v1031_v15  ;;  %v985_v27 = vunpack.c.l.bf16 %v1039_v16  ;;  %v986_v28 = vunpack.c.h.bf16 %v1039_v16  ;;  %v1712_v30 = vld [vmem:[%s1657_s29 + $0x58] sm:$0xff]  }
  0x99   : > { %v1704_v24 = vld [vmem:[%s1657_s29 + $0xa0] sm:$0xff]   ;;  %v1017_v31 = vunpack.c.l.bf16 %v1692_v17  ;;  %v1018_v32 = vunpack.c.h.bf16 %v1692_v17  ;;  %v949_v33 = vunpack.c.l.bf16 %v1698_v22  ;;  %v950_v34 = vunpack.c.h.bf16 %v1698_v22  ;;  %v1719_v35 = vld [vmem:[%s1657_s29 + $0x98] sm:$0xff]  }
  0x9a   : > { %s1674_s21 = smul.u32 3, %s1955_s11  ;;  %s1677_s23 = sld [smem:[#allocation7 + %s1955_s11]]  ;;  %v981_v37 = vunpack.c.l.bf16 %v1701_v23  ;;  %v982_v38 = vunpack.c.h.bf16 %v1701_v23  ;;  %v1013_v39 = vunpack.c.l.bf16 %v1704_v24  ;;  %v1014_v40 = vunpack.c.h.bf16 %v1704_v24  ;;  %v1222_v48 = vld [vmem:[%s325_s6] sm:$0xff]  }
  0x9b   : > { %v945_v41 = vunpack.c.l.bf16 %v1709_v29  ;;  %v946_v42 = vunpack.c.h.bf16 %v1709_v29  ;;  %v977_v43 = vunpack.c.l.bf16 %v1712_v30  ;;  %v978_v45 = vunpack.c.h.bf16 %v1712_v30  ;;  %1076 = vmatprep.mubr.bf16.mxu0 %v1222_v48  ;;  %v1036_v24 = vld [vmem:[%s1657_s29 + $0x50] sm:$0xff]   ;;  %p688_p11 = scmp.eq.s32.totalorder %s1955_s11, 31 }
  0x9c   : > { %s1686_s17 = sld [smem:[#allocation3 + %s1674_s21]]  ;;  %s367_s14 = sadd.s32 1, %s1674_s21  ;;  %v1009_v46 = vunpack.c.l.bf16 %v1719_v35  ;;  %v1010_v47 = vunpack.c.h.bf16 %v1719_v35 }
  0x9d   : > { %s1694_s5 = sld [smem:[#allocation3 + %s367_s14]]  ;;  %s369_s0 = sadd.s32 2, %s1674_s21 }
  0x9e   : > { %s1706_s30 = sld [smem:[#allocation3 + %s369_s0]]  ;;  %p1838_p3 = pnand %p688_p11, %p687_p7 }
  0x9f   : > { %s1957_s16 = sld [smem:[#allocation31_spill]] (!%p1838_p3) }
  0xa0   : > { %v1722_v36 = vstv %s1677_s23 }
  0xa2   : > { %v1732_v44 = vstv %s1686_s17 }
  0xa3   : > { %v419_v49 = vmul.f32 %v961_v4, %v1732_v44  ;;  %v420_v50 = vmul.f32 %v962_v5, %v1732_v44  ;;  %v1742_v51 = vstv %s1694_s5  ;;  %v417_v52 = vmul.f32 %v957_v13, %v1732_v44 }
  0xa4   : > { %v469_v53 = vmul.f32 %v993_v6, %v1742_v51  ;;  %v470_v54 = vmul.f32 %v994_v7, %v1742_v51  ;;  %v1748_v55 = vstv %s1706_s30  ;;  %v418_v56 = vmul.f32 %v958_v14, %v1732_v44 }
  0xa5   : > { %v535_v57 = vmul.f32 %v1025_v11, %v1748_v55  ;;  %v536_v58 = vmul.f32 %v1026_v12, %v1748_v55  ;;  %v467_v59 = vmul.f32 %v989_v18, %v1742_v51  ;;  %v468_v60 = vmul.f32 %v990_v19, %v1742_v51 }
  0xa6   : > { %v485_v61 = vadd.f32 %v469_v53, %v419_v49  ;;  %v486_v62 = vadd.f32 %v470_v54, %v420_v50  ;;  %v533_v63 = vmul.f32 %v1021_v20, %v1748_v55  ;;  %v534_v0 = vmul.f32 %v1022_v21, %v1748_v55 }
  0xa7   : > { %v483_v1 = vadd.f32 %v467_v59, %v417_v52  ;;  %v484_v2 = vadd.f32 %v468_v60, %v418_v56  ;;  %v415_v3 = vmul.f32 %v953_v25, %v1732_v44  ;;  %v416_v4 = vmul.f32 %v954_v26, %v1732_v44 }
  0xa8   : > { %v551_v5 = vadd.f32 %v535_v57, %v485_v61  ;;  %v552_v6 = vadd.f32 %v536_v58, %v486_v62  ;;  %v465_v7 = vmul.f32 %v985_v27, %v1742_v51  ;;  %v466_v8 = vmul.f32 %v986_v28, %v1742_v51  ;;  %v1028_v61 = vld [vmem:[%s1657_s29 + $0x10] sm:$0xff]  }
  0xa9   : > { %v549_v9 = vadd.f32 %v533_v63, %v483_v1  ;;  %v550_v10 = vadd.f32 %v534_v0, %v484_v2  ;;  %v531_v11 = vmul.f32 %v1017_v31, %v1748_v55  ;;  %v532_v12 = vmul.f32 %v1018_v32, %v1748_v55 }
  0xaa   : > { %v568_v13 = vadd.f32 %v1722_v36, %v551_v5  ;;  %v569_v14 = vadd.f32 %v1722_v36, %v552_v6  ;;  %v481_v15 = vadd.f32 %v465_v7, %v415_v3  ;;  %v482_v16 = vadd.f32 %v466_v8, %v416_v4  ;;  %v1044_v6 = vld [vmem:[%s1657_s29 + $0x90] sm:$0xff]  }
  0xab   : > { %v566_v17 = vadd.f32 %v1722_v36, %v549_v9  ;;  %v567_v18 = vadd.f32 %v1722_v36, %v550_v10  ;;  %v413_v19 = vmul.f32 %v949_v33, %v1732_v44  ;;  %v414_v20 = vmul.f32 %v950_v34, %v1732_v44 }
  0xac   : > { %v584_v21 = vmul.f32 0.2, %v568_v13  ;;  %v585_v22 = vmul.f32 0.2, %v569_v14  ;;  %v547_v23 = vadd.f32 %v531_v11, %v481_v15  ;;  %v548_v25 = vadd.f32 %v532_v12, %v482_v16  ;;  %v1027_v12 = vld [vmem:[%s1657_s29 + $0x8] sm:$0xff]  }
  0xad   : > { %v582_v26 = vmul.f32 0.2, %v566_v17  ;;  %v583_v27 = vmul.f32 0.2, %v567_v18  ;;  %v463_v28 = vmul.f32 %v981_v37, %v1742_v51  ;;  %v464_v31 = vmul.f32 %v982_v38, %v1742_v51 }
  0xae   : > { %v600_v32 = vmax.f32 %v568_v13, %v584_v21  ;;  %v601_v48 = vmax.f32 %v569_v14, %v585_v22  ;;  %v564_v49 = vadd.f32 %v1722_v36, %v547_v23  ;;  %v565_v50 = vadd.f32 %v1722_v36, %v548_v25  ;;  %v1035_v21 = vld [vmem:[%s1657_s29 + $0x48] sm:$0xff]  }
  0xaf   : > { %v598_v33 = vmax.f32 %v566_v17, %v582_v26  ;;  %v599_v52 = vmax.f32 %v567_v18, %v583_v27  ;;  %v479_v34 = vadd.f32 %v463_v28, %v413_v19  ;;  %v480_v53 = vadd.f32 %v464_v31, %v414_v20 }
  0xb0   : > { %v617_v54 = vpack.c.bf16 %v601_v48, %v600_v32  ;;  %v580_v56 = vmul.f32 0.2, %v564_v49  ;;  %v581_v57 = vmul.f32 0.2, %v565_v50  ;;  %v529_v37 = vmul.f32 %v1013_v39, %v1748_v55  ;;  %v1043_v48 = vld [vmem:[%s1657_s29 + $0x88] sm:$0xff]  }
  0xb1   : > { %v616_v38 = vpack.c.bf16 %v599_v52, %v598_v33  ;;  %v530_v58 = vmul.f32 %v1014_v40, %v1748_v55  ;;  %v411_v59 = vmul.f32 %v945_v41, %v1732_v44  ;;  %v412_v60 = vmul.f32 %v946_v42, %v1732_v44 }
  0xb2   : > { %1060 = vmatprep.subr.bf16.mxu0 %v617_v54  ;;  %v596_v62 = vmax.f32 %v564_v49, %v580_v56  ;;  %v597_v63 = vmax.f32 %v565_v50, %v581_v57  ;;  %v545_v0 = vadd.f32 %v529_v37, %v479_v34  ;;  %v461_v39 = vmul.f32 %v977_v43, %v1742_v51  ;;  %v932_v34 = vld [vmem:[%s1657_s29] sm:$0xff]  }
  0xb3   : > { %1061 = vmatpush3.bf16.msra.mxu0 %v617_v54  ;;  %v546_v40 = vadd.f32 %v530_v58, %v480_v53  ;;  %v462_v41 = vmul.f32 %v978_v45, %v1742_v51  ;;  %v527_v29 = vmul.f32 %v1009_v46, %v1748_v55  ;;  %v528_v42 = vmul.f32 %v1010_v47, %v1748_v55 }
  0xb4   : > { %1062 = vmatprep.subr.bf16.mxu0 %v616_v38  ;;  %v615_v1 = vpack.c.bf16 %v597_v63, %v596_v62  ;;  %v562_v43 = vadd.f32 %v1722_v36, %v545_v0  ;;  %v477_v2 = vadd.f32 %v461_v39, %v411_v59  ;;  %v941_v3 = vunpack.c.l.bf16 %v1028_v61  ;;  %v1034_v0 = vld [vmem:[%s1657_s29 + $0x40] sm:$0xff]  }
  0xb5   : > { %v563_v4 = vadd.f32 %v1722_v36, %v546_v40  ;;  %v478_v5 = vadd.f32 %v462_v41, %v412_v60  ;;  %v942_v30 = vunpack.c.h.bf16 %v1028_v61  ;;  %v973_v45 = vunpack.c.l.bf16 %v1036_v24 }
  0xb6   : > { %v578_v7 = vmul.f32 0.2, %v562_v43  ;;  %v543_v8 = vadd.f32 %v527_v29, %v477_v2  ;;  %v409_v46 = vmul.f32 %v941_v3, %v1732_v44  ;;  %v974_v9 = vunpack.c.h.bf16 %v1036_v24  ;;  %v1042_v29 = vld [vmem:[%s1657_s29 + $0x80] sm:$0xff]  }
  0xb7   : > { %1063 = vmatpush3.bf16.msra.mxu0 %v616_v38  ;;  %v579_v35 = vmul.f32 0.2, %v563_v4  ;;  %v544_v47 = vadd.f32 %v528_v42, %v478_v5  ;;  %v410_v10 = vmul.f32 %v942_v30, %v1732_v44  ;;  %v459_v11 = vmul.f32 %v973_v45, %v1742_v51 }
  0xb8   : > { %1064 = vmatprep.subr.bf16.mxu0 %v615_v1  ;;  %v594_v13 = vmax.f32 %v562_v43, %v578_v7  ;;  %v560_v14 = vadd.f32 %v1722_v36, %v543_v8  ;;  %v460_v15 = vmul.f32 %v974_v9, %v1742_v51  ;;  %v1005_v16 = vunpack.c.l.bf16 %v1044_v6 }
  0xb9   : > { %v595_v17 = vmax.f32 %v563_v4, %v579_v35  ;;  %v561_v18 = vadd.f32 %v1722_v36, %v544_v47  ;;  %v475_v19 = vadd.f32 %v459_v11, %v409_v46  ;;  %v1006_v20 = vunpack.c.h.bf16 %v1044_v6 }
  0xba   : > { %v576_v22 = vmul.f32 0.2, %v560_v14  ;;  %v476_v23 = vadd.f32 %v460_v15, %v410_v10  ;;  %v525_v25 = vmul.f32 %v1005_v16, %v1748_v55  ;;  %v937_v26 = vunpack.c.l.bf16 %v1027_v12 }
  0xbb   : > { %1065 = vmatpush3.bf16.msra.mxu0 %v615_v1  ;;  %v614_v27 = vpack.c.bf16 %v595_v17, %v594_v13  ;;  %v577_v28 = vmul.f32 0.2, %v561_v18  ;;  %v526_v31 = vmul.f32 %v1006_v20, %v1748_v55  ;;  %v938_v32 = vunpack.c.h.bf16 %v1027_v12 }
  0xbc   : > { %v592_v49 = vmax.f32 %v560_v14, %v576_v22  ;;  %v541_v50 = vadd.f32 %v525_v25, %v475_v19  ;;  %v407_v33 = vmul.f32 %v937_v26, %v1732_v44  ;;  %v969_v52 = vunpack.c.l.bf16 %v1035_v21 }
  0xbd   : > { %1066 = vmatprep.subr.bf16.mxu0 %v614_v27  ;;  %v593_v53 = vmax.f32 %v561_v18, %v577_v28  ;;  %v542_v54 = vadd.f32 %v526_v31, %v476_v23  ;;  %v408_v56 = vmul.f32 %v938_v32, %v1732_v44  ;;  %v970_v57 = vunpack.c.h.bf16 %v1035_v21  ;;  %v1223_v28 = vld [vmem:[%s325_s6 + $0x8] sm:$0xff]   ;;  %v602_v32 = vld [vmem:[#allocation2 + $0x10] sm:$0xff] }
  0xbe   : > { %v558_v37 = vadd.f32 %v1722_v36, %v541_v50  ;;  %v457_v38 = vmul.f32 %v969_v52, %v1742_v51  ;;  %v1001_v58 = vunpack.c.l.bf16 %v1043_v48  ;;  %v1002_v59 = vunpack.c.h.bf16 %v1043_v48  ;;  %v605_v50 = vld [vmem:[#allocation2 + $0x8] sm:$0xff] }
  0xbf   : > { %1067 = vmatpush3.bf16.msra.mxu0 %v614_v27  ;;  %v613_v60 = vpack.c.bf16 %v593_v53, %v592_v49  ;;  %v559_v61 = vadd.f32 %v1722_v36, %v542_v54  ;;  %v458_v62 = vmul.f32 %v970_v57, %v1742_v51  ;;  %v933_v63 = vunpack.c.l.bf16 %v932_v34 }
  0xc0   : > { %v574_v39 = vmul.f32 0.2, %v558_v37  ;;  %v473_v24 = vadd.f32 %v457_v38, %v407_v33  ;;  %v523_v40 = vmul.f32 %v1001_v58, %v1748_v55  ;;  %v524_v41 = vmul.f32 %v1002_v59, %v1748_v55 }
  0xc1   : > { %1068 = vmatprep.subr.bf16.mxu0 %v613_v60  ;;  %v575_v42 = vmul.f32 0.2, %v559_v61  ;;  %v474_v1 = vadd.f32 %v458_v62, %v408_v56  ;;  %v934_v43 = vunpack.c.h.bf16 %v932_v34  ;;  %v405_v2 = vmul.f32 %v933_v63, %v1732_v44  ;;  %v603_v34 = vld [vmem:[#allocation2] sm:$0xff] }
  0xc2   : > { %v590_v3 = vmax.f32 %v558_v37, %v574_v39  ;;  %v539_v4 = vadd.f32 %v523_v40, %v473_v24  ;;  %v965_v5 = vunpack.c.l.bf16 %v1034_v0  ;;  %v966_v30 = vunpack.c.h.bf16 %v1034_v0 }
  0xc3   : > { %1069 = vmatpush3.bf16.msra.mxu0 %v613_v60  ;;  %v591_v45 = vmax.f32 %v559_v61, %v575_v42  ;;  %v540_v6 = vadd.f32 %v524_v41, %v474_v1  ;;  %v406_v7 = vmul.f32 %v934_v43, %v1732_v44  ;;  %v997_v8 = vunpack.c.l.bf16 %v1042_v29 }
  0xc4   : > { %v556_v46 = vadd.f32 %v1722_v36, %v539_v4  ;;  %v455_v9 = vmul.f32 %v965_v5, %v1742_v51  ;;  %v456_v35 = vmul.f32 %v966_v30, %v1742_v51  ;;  %v998_v47 = vunpack.c.h.bf16 %v1042_v29 }
  0xc5   : > { %v612_v10 = vpack.c.bf16 %v591_v45, %v590_v3  ;;  %v557_v11 = vadd.f32 %v1722_v36, %v540_v6  ;;  %v521_v12 = vmul.f32 %v997_v8, %v1748_v55 }
  0xc6   : > { %v572_v13 = vmul.f32 0.2, %v556_v46  ;;  %v471_v14 = vadd.f32 %v455_v9, %v405_v2  ;;  %v472_v15 = vadd.f32 %v456_v35, %v406_v7  ;;  %v522_v16 = vmul.f32 %v998_v47, %v1748_v55 }
  0xc7   : > { %1070 = vmatprep.subr.bf16.mxu0 %v612_v10  ;;  %v573_v44 = vmul.f32 0.2, %v557_v11 }
  0xc8   : > { %1071 = vmatpush3.bf16.msra.mxu0 %v612_v10  ;;  %v588_v17 = vmax.f32 %v556_v46, %v572_v13  ;;  %v537_v18 = vadd.f32 %v521_v12, %v471_v14  ;;  %v538_v19 = vadd.f32 %v522_v16, %v472_v15 }
  0xc9   : > { %v589_v51 = vmax.f32 %v557_v11, %v573_v44 }
  0xca   : > { %v554_v20 = vadd.f32 %v1722_v36, %v537_v18  ;;  %v555_v21 = vadd.f32 %v1722_v36, %v538_v19  ;;  %v604_v36 = vld [vmem:[#allocation2 + $0x18] sm:$0xff] }
  0xcb   : > { %v611_v22 = vpack.c.bf16 %v589_v51, %v588_v17 }
  0xcc   : > { %v570_v23 = vmul.f32 0.2, %v554_v20  ;;  %v571_v25 = vmul.f32 0.2, %v555_v21 }
  0xcd   : > { %1072 = vmatprep.subr.bf16.mxu0 %v611_v22 }
  0xce   : > { %1073 = vmatpush3.bf16.msra.mxu0 %v611_v22  ;;  %v586_v55 = vmax.f32 %v554_v20, %v570_v23  ;;  %v587_v26 = vmax.f32 %v555_v21, %v571_v25 }
  0xd0   : > { %v610_v27 = vpack.c.bf16 %v587_v26, %v586_v55 }
  0xd2   : > { %1074 = vmatprep.subr.bf16.mxu0 %v610_v27 }
  0xd3   : > { %1075 = vmatpush3.bf16.msra.mxu0 %v610_v27 }
  0xd6   : > { %1077 = vmatmul.mubr.bf16.vlgmr.msra.gmra.mxu0 %v1223_v28 }
 0x196   : > { %v1078_v31 = vpop.f32.mrf.mxu0 }
 0x197   : > { %v681_v48 = vadd.f32 %v1078_v31, %v604_v36 }
 0x198   : > { %v664_v49 = vpop.f32.mrf.mxu0 }
 0x199   : > { %685 = vst [vmem:[#allocation2 + $0x18] sm:$0xff] %v681_v48  ;;  %v679_v33 = vadd.f32 %v664_v49, %v602_v32 }
 0x19a   : > { %v1079_v52 = vpop.f32.mrf.mxu0 }
 0x19b   : > { %683 = vst [vmem:[#allocation2 + $0x10] sm:$0xff] %v679_v33  ;;  %v682_v53 = vadd.f32 %v1079_v52, %v605_v50  ;;  %692 = sbr.rel (%p1838_p3) target bundleno = 584 (0x248), region = 64 }
 0x19c   : > { %v667_v54 = vpop.f32.mrf.mxu0 }
 0x19d   : > { %686 = vst [vmem:[#allocation2 + $0x8] sm:$0xff] %v682_v53  ;;  %v680_v56 = vadd.f32 %v667_v54, %v603_v34 }
 0x19f   : > { %684 = vst [vmem:[#allocation2] sm:$0xff] %v680_v56 }
 0x1a0   : > { %v699_v57 = vld [vmem:[%s1957_s16 + $0x10] sm:$0xff]  ;;  %v697_v37 = vld [vmem:[%s1957_s16] sm:$0xff]  ;;  %v1443_v38 = vmov 0   ;;  %v700_v58 = vld [vmem:[%s1957_s16 + $0x18] sm:$0xff] }
 0x1a1   : > { %1225 = vset.pattern.permute.xlu1 %v1443_v38  ;;  %1224 = vset.pattern.permute.xlu0 %v1443_v38  ;;  %v698_v59 = vld [vmem:[%s1957_s16 + $0x8] sm:$0xff]  ;;  %v695_v60 = vld [vmem:[#allocation2 + $0x18] sm:$0xff] }
 0x1a2   : > { %713 = vperm.xlu1 %1225, %v699_v57   ;;  %703 = vperm.xlu0 %1224, %v697_v37   ;;  %v693_v61 = vld [vmem:[#allocation2 + $0x10] sm:$0xff] }
 0x1a4   : > { %v696_v24 = vld [vmem:[#allocation2 + $0x8] sm:$0xff] }
 0x1a6   : > { %718 = vperm.xlu1 %1225, %v700_v58   ;;  %708 = vperm.xlu0 %1224, %v698_v59   ;;  %v694_v40 = vld [vmem:[#allocation2] sm:$0xff] }
 0x21d   : > { %v714_v62 = vpop.permute.xlu1 %713  ;;  %v704_v63 = vpop.permute.xlu0 %703 }
 0x21e   : > { %v723_v0 = vadd.f32 %v714_v62, %v695_v60  ;;  %v721_v39 = vadd.f32 %v704_v63, %v693_v61 }
 0x220   : > { %v727_v41 = vsub.f32 0.0, %v723_v0  ;;  %v725_v29 = vsub.f32 0.0, %v721_v39 }
 0x221   : > { %v719_v42 = vpop.permute.xlu1 %718  ;;  %v709_v1 = vpop.permute.xlu0 %708 }
 0x222   : > { %v733_v43 = vmul.f32 1.442695, %v727_v41  ;;  %v729_v2 = vmul.f32 1.442695, %v725_v29  ;;  %v724_v3 = vadd.f32 %v719_v42, %v696_v24  ;;  %v722_v4 = vadd.f32 %v709_v1, %v694_v40 }
 0x224   : > { %1226 = vpow2.f32 %v733_v43  ;;  %v728_v5 = vsub.f32 0.0, %v724_v3  ;;  %v726_v30 = vsub.f32 0.0, %v722_v4 }
 0x225   : > { %1228 = vpow2.f32 %v729_v2 }
 0x226   : > { %v735_v45 = vmul.f32 1.442695, %v728_v5  ;;  %v731_v6 = vmul.f32 1.442695, %v726_v30 }
 0x228   : > { %1230 = vpow2.f32 %v735_v45 }
 0x229   : > { %1232 = vpow2.f32 %v731_v6 }
 0x231   : > { %v1227_v7 = vpop.eup %1226 }
 0x232   : > { %v1229_v8 = vpop.eup %1228  ;;  %v739_v46 = vadd.f32 1.0, %v1227_v7 }
 0x233   : > { %v737_v9 = vadd.f32 1.0, %v1229_v8 }
 0x234   : > { %1234 = vrcp.f32 %v739_v46 }
 0x235   : > { %v1231_v35 = vpop.eup %1230  ;;  %1236 = vrcp.f32 %v737_v9 }
 0x236   : > { %v1233_v47 = vpop.eup %1232  ;;  %v740_v10 = vadd.f32 1.0, %v1231_v35 }
 0x237   : > { %v738_v11 = vadd.f32 1.0, %v1233_v47 }
 0x238   : > { %1238 = vrcp.f32 %v740_v10 }
 0x239   : > { %1240 = vrcp.f32 %v738_v11 }
 0x241   : > { %v1235_v12 = vpop.eup %1234 }
 0x242   : > { %v1237_v13 = vpop.eup %1236  ;;  %747 = vst [vmem:[#allocation12 + $0x10] sm:$0xff] %v1235_v12 }
 0x243   : > { %745 = vst [vmem:[#allocation12] sm:$0xff] %v1237_v13 }
 0x245   : > { %v1239_v14 = vpop.eup %1238 }
 0x246   : > { %v1241_v15 = vpop.eup %1240  ;;  %748 = vst [vmem:[#allocation12 + $0x18] sm:$0xff] %v1239_v14 }
 0x247   : > { %746 = vst [vmem:[#allocation12 + $0x8] sm:$0xff] %v1241_v15 }
 0x248 PF: > { %s1958_s18 = sld [smem:[#allocation23_spill]]  ;;  %s1444_s7 = smov [#allocation12]  }
 0x249   : > { %s757_s8 = sshll.u32 %s1444_s7, 4  ;;  %s758_s8 = int_to_ptr.vmem [resolvable:$true] %s757_s8 }
 0x24a   : > { %s1298_s6 = scalar_lea.vmem %s758_s8, 512  ;;  %p1305_p0 = scmp.lt.s32.totalorder %s758_s8, %s758_s8 }
 0x24b   : > { %p1299_p9 = scmp.ne.s32.totalorder %s758_s8, %s1298_s6  ;;  %p1306_p2 = scmp.lt.s32.totalorder %s1298_s6, %s1298_s6 }
 0x24d   : > { %p1307_p8 = por %p1306_p2, %p1305_p0 }
 0x24e   : > { %s1959_s29 = sadd.s32 4294967295, %s1958_s18  }
 0x24f   : > { %p1858_p4 = scmp.eq.s32.totalorder %s1959_s29, 63 }
 0x251   : > { %p1300_p12 = pnand %p1299_p9, %p1858_p4 }
 0x253   : > { %p1301_p13 = pneg %p1300_p12 }
 0x255   : > { %p1308_p10 = pnand %p1307_p8, %p1301_p13 }
 0x257   : > { %1311 = shalt.err (!%p1308_p10)
}
 0x258   : > { %s1445_s1 = smov 128   ;;  %s1446_s11 = smov 8  }
 0x259   : > { %s1961_s17 = sld [smem:[#allocation32_spill]] }
 0x25f   : > { %1102 = dma.vmem_to_hbm [thread:$0]  (%p1858_p4), %s758_s8, 512, %s1961_s17, [#allocation5], %s1445_s1, %s1445_s1, %s1446_s11  }
 0x260   : > { %1383 = dma.done.wait (%p1858_p4), [#allocation5], 512  }
 0x261   : > { %1385 = vsyncadd (%p1858_p4), [#allocation5], 4294966784 }
 0x262 PF: > { %s1962_s14 = sld [smem:[#allocation23_spill]]  ;;  %s1968_s18 = smov %s1392_s19 }
 0x263   : > { %s1963_s5 = sld [smem:[#allocation27_spill]]  ;;  %s1969_s19 = smov %s1396_s20 }
 0x264   : > { %s1964_s0 = sld [smem:[#allocation21_spill]]  ;;  %s1971_s21 = smov %s1404_s22 }
 0x265   : > { %s1965_s23 = sld [smem:[#allocation26_spill]]  ;;  %s1973_s24 = smov %s1420_s26 }
 0x266   : > { %s1966_s30 = sld [smem:[#allocation24_spill]]  ;;  %s1974_s25 = smov %s1424_s27 }
 0x267   : > { %s1967_s13 = sld [smem:[#allocation25_spill]] }
 0x268   : > { %s24_s28 = sadd.s32 1, %s1962_s14  }
 0x269   : > { %p21_p1 = scmp.ge.s32.totalorder %s24_s28, 66   ;;  %s1970_s20 = smov %s1963_s5 }
 0x26a   : > { %s1972_s22 = smov %s1964_s0 }
 0x26b   :  { %23 = sbr.rel (!%p21_p1) target bundleno = 18 (0x12), region = 115 }
 0x26c   : > { %s1975_s26 = smov %s1966_s30 }
 0x26d   : > { %s1976_s27 = smov %s1967_s13 }
 0x270   :  { %773 = vsyncpa [#allocation4], 1 }
 0x271   :  { %775 = vsyncpa [#allocation4 + $0x1], 1 }
 0x272   :  { %776 = vsyncpa [#allocation11], 1 }
 0x273   :  { %778 = vsyncpa [#allocation11 + $0x1], 1 }
 0x274   :  { %779 = vsyncpa [#allocation5], 1 }
 0x275   :  { %781 = vsyncpa [#allocation5 + $0x1], 1 }
 0x276   :  { %782 = vsyncpa [#allocation6], 1 }
 0x277   :  { %784 = vsyncpa [#allocation6 + $0x1], 1 }
 0x278   :  { %785 = vsyncpa [#allocation8], 1 }

</bundles_post_ra>
